<compile_context>
chip_gen: v7x
topology: tpu7x:2x2x1
jax: 0.10.0
libtpu: 0.0.40
codegen_flags: <defaults>
</compile_context>

<pallas_src>
import functools

import jax
import jax.numpy as jnp
from jax.experimental import pallas as pl
from jax.experimental.pallas import tpu as pltpu

_LANES = 128      # lane width of a TPU vreg
_SUBLANES = 8     # sublane count of a TPU vreg


def _round_up(x: int, m: int) -> int:
    return ((x + m - 1) // m) * m


def _prediction_kernel(bias_ref, x_ref, o_ref, *, task: str, use_bias: bool):
    """Elementwise hot path on one lane-dense (block_rows, 128) tile."""
    out = x_ref[...]
    if use_bias:
        out = out + bias_ref[0]          # scalar bias from SMEM, broadcasts
    if task == "binary":
        out = jax.nn.sigmoid(out)
    o_ref[...] = out.astype(o_ref.dtype)


def prediction_layer(x: jax.Array,
                     bias: jax.Array | None = None,
                     *,
                     task: str = "binary",
                     use_bias: bool = True,
                     block_rows: int = 8192,
                     min_pallas_elems: int = 1 << 20,
                     donate_logits: bool = False) -> jax.Array:
    """Pallas implementation of PredictionLayer.forward.

    x    : any-shape float logits (typically (batch, 1))
    bias : (1,) float bias parameter (required when use_bias=True)
    """
    if task not in ("binary", "multiclass", "regression"):
        raise ValueError("task must be binary, multiclass or regression")
    if use_bias and bias is None:
        raise ValueError("bias is required when use_bias=True")

    n = int(x.size)
    orig_shape = x.shape
    dtype = x.dtype

    # ---- small-input fast path: let XLA fuse it (no kernel launch) ----------
    if n < min_pallas_elems:
        out = x
        if use_bias:
            out = out + bias
        if task == "binary":
            out = jax.nn.sigmoid(out)
        return out.astype(dtype)

    # ---- Pallas path: lane-dense (rows, 128) slab ----------------------------
    bias32 = (bias if bias is not None else jnp.zeros((1,), jnp.float32))
    bias32 = bias32.reshape((1,)).astype(jnp.float32)   # 32-bit scalar for SMEM

    rows = pl.cdiv(n, _LANES)
    lane_padded = (rows * _LANES) != n

    flat = x.reshape(-1)
    if lane_padded:                       # only when n % 128 != 0 (<=127 elems)
        flat = jnp.pad(flat, (0, rows * _LANES - n))
    x2d = flat.reshape(rows, _LANES)      # zero-copy reshape when not padded

    # Block rows: multiple of 8 (sublane), capped for VMEM.  Force >=2 grid
    # steps when there is enough work so both v7x TensorCores get a shard.
    br = max(_SUBLANES, min(int(block_rows), _round_up(rows, _SUBLANES)))
    br = (br // _SUBLANES) * _SUBLANES
    if rows > 2 * _SUBLANES:
        br = min(br, _round_up(pl.cdiv(rows, 2), _SUBLANES))
    grid = (pl.cdiv(rows, br),)           # Pallas masks the partial last block

    kernel = functools.partial(_prediction_kernel, task=task, use_bias=use_bias)

    call_kwargs = {}
    if donate_logits:
        # Reuse the x2d HBM buffer for the output (elementwise-in-place op).
        call_kwargs["input_output_aliases"] = {1: 0}

    out2d = pl.pallas_call(
        kernel,
        out_shape=jax.ShapeDtypeStruct((rows, _LANES), dtype),
        grid_spec=pltpu.PrefetchScalarGridSpec(
            num_scalar_prefetch=0,
            grid=grid,
            in_specs=[
                pl.BlockSpec(memory_space=pltpu.MemorySpace.SMEM),  # (1,) bias
                pl.BlockSpec((br, _LANES), lambda i: (i, 0)),       # data tile
            ],
            out_specs=pl.BlockSpec((br, _LANES), lambda i: (i, 0)),
        ),
        compiler_params=pltpu.CompilerParams(
            dimension_semantics=("parallel",),   # shard row tiles across TCs
            vmem_limit_bytes=32 << 20,           # raise v5e's 16 MiB default
        ),
        **call_kwargs,
    )(bias32, x2d)

    # ---- unpack back to the original layout ---------------------------------
    if lane_padded:
        return out2d.reshape(-1)[:n].reshape(orig_shape)
    return out2d.reshape(orig_shape)


if __name__ == "__main__":
    key = jax.random.PRNGKey(0)

    # Parameter init exactly as in the module: bias = zeros((1,))
    bias = jnp.zeros((1,), dtype=jnp.float32)

    # --- module-realistic small shape: (batch, 1) logits -> jnp fast path ----
    batch = 8
    x_small = jax.random.normal(key, (batch, 1), dtype=jnp.float32)
    out_small = jax.block_until_ready(
        prediction_layer(x_small, bias, task="binary", use_bias=True))
    ref_small = jax.nn.sigmoid(x_small + bias)
    assert out_small.shape == x_small.shape and out_small.dtype == x_small.dtype
    assert jnp.allclose(out_small, ref_small, atol=1e-6), "binary mismatch"

    # regression task: no sigmoid
    out_reg = jax.block_until_ready(
        prediction_layer(x_small, bias, task="regression", use_bias=True))
    assert jnp.allclose(out_reg, x_small + bias, atol=1e-6), "regression mismatch"

    # --- force the Pallas path: multiple-of-128 size, zero-copy repack,
    #     2 grid steps (exercises the kernel + tiling) -------------------------
    x_pal = jax.random.normal(jax.random.PRNGKey(1), (4096, 1), dtype=jnp.float32)
    out_pal = jax.block_until_ready(
        prediction_layer(x_pal, bias, task="binary", use_bias=True,
                         min_pallas_elems=0))
    assert jnp.allclose(out_pal, jax.nn.sigmoid(x_pal + bias), atol=1e-6), \
        "pallas-path mismatch"

    # --- non-multiple-of-128 size: lane pad + partial last block masking -----
    x_odd = jax.random.normal(jax.random.PRNGKey(2), (40000, 1), dtype=jnp.float32)
    out_odd = jax.block_until_ready(
        prediction_layer(x_odd, bias, task="binary", use_bias=True,
                         min_pallas_elems=0))
    assert out_odd.shape == x_odd.shape
    assert jnp.allclose(out_odd, jax.nn.sigmoid(x_odd + bias), atol=1e-6), \
        "partial-block mismatch"

    print("KERNEL_OK")
</pallas_src>

<mosaic_0001>
module attributes {stable_mosaic.version = 11 : i64} {
  func.func @_prediction_kernel(%arg0: i32, %arg1: memref<1xf32, #tpu.memory_space<smem>>, %arg2: memref<16x128xf32, #tpu.memory_space<vmem>>, %arg3: memref<16x128xf32, #tpu.memory_space<vmem>>) attributes {dimension_semantics = [#tpu.dimension_semantics<parallel>], iteration_bounds = array<i64: 2>, scalar_prefetch = 0 : i64, scratch_operands = 0 : i64, tpu.core_type = #tpu.core_type<tc>, window_params = [{transform_indices = @transform_0, window_bounds = array<i64: 1>}, {transform_indices = @transform_1, window_bounds = array<i64: 16, 128>}, {transform_indices = @transform_2, window_bounds = array<i64: 16, 128>}]} {
    %c0 = arith.constant 0 : index
    %c0_0 = arith.constant 0 : index
    %0 = vector.load %arg2[%c0, %c0_0] : memref<16x128xf32, #tpu.memory_space<vmem>>, vector<16x128xf32>
    %c0_1 = arith.constant 0 : index
    %1 = memref.load %arg1[%c0_1] : memref<1xf32, #tpu.memory_space<smem>>
    %2 = vector.broadcast %1 : f32 to vector<16x128xf32>
    %3 = arith.addf %0, %2 : vector<16x128xf32>
    %4 = arith.negf %3 : vector<16x128xf32>
    %5 = math.exp %4 : vector<16x128xf32>
    %cst = arith.constant 1.000000e+00 : f32
    %6 = vector.broadcast %cst : f32 to vector<16x128xf32>
    %7 = arith.addf %6, %5 : vector<16x128xf32>
    %8 = arith.divf %6, %7 : vector<16x128xf32>
    %c0_2 = arith.constant 0 : index
    %c0_3 = arith.constant 0 : index
    %9 = vector.load %arg3[%c0_2, %c0_3] : memref<16x128xf32, #tpu.memory_space<vmem>>, vector<16x128xf32>
    tpu.vector_store %arg3[%c0_2, %c0_3], %8 {strides = array<i32>} : memref<16x128xf32, #tpu.memory_space<vmem>>, vector<16x128xf32>,
    return
  }
  func.func @transform_0(%arg0: i32) -> i32 {
    %c0_i32 = arith.constant 0 : i32
    %c0_i32_0 = arith.constant 0 : i32
    return %c0_i32 : i32
  }
  func.func @transform_1(%arg0: i32) -> (i32, i32) {
    %c0_i32 = arith.constant 0 : i32
    %c0_i32_0 = arith.constant 0 : i32
    return %arg0, %c0_i32 : i32, i32
  }
  func.func @transform_2(%arg0: i32) -> (i32, i32) {
    %c0_i32 = arith.constant 0 : i32
    %c0_i32_0 = arith.constant 0 : i32
    return %arg0, %c0_i32 : i32, i32
  }
}

</mosaic_0001>

<bundles_post_ra>
// kernel: tpu_custom_call.1
= control target key start
LH: loop header
LB: loop body
LE: loop exit
PB: predicated region body
PF: predicated region fallthrough
CT: control target
= control target key end

     0   :  { %s632_s0 = inlined_call_operand.<no memory space> [shape: f32[1], index: 0, kind: input, shape index: {}]   ;;  %s633_s1 = inlined_call_operand.hbm [shape: f32[32,128], index: 1, kind: input, shape index: {}]   ;;  %s634_s2 = inlined_call_operand.hbm [shape: f32[32,128], index: 2, kind: output, shape index: {}]  }
   0x1   :  { %7 = sst [smem:[#allocation2]] %s632_s0 }
   0x2   :  { %8 = vsyncpa [#allocation4], 0 }
   0x3   :  { %10 = vsyncpa [#allocation4 + $0x1], 0 }
   0x4   :  { %11 = vsyncpa [#allocation5], 0 }
   0x5   :  { %13 = vsyncpa [#allocation5 + $0x1], 0  ;;  %s470_s11 = smov 0   ;;  %s472_s12 = smov 0  }
   0x6   :  { %s474_s13 = smov 0   ;;  %s476_s14 = smov 0  }
   0x7 LB: > { %s491_s0 = sadd.s32 4294967295, %s444_s14   ;;  %s272_s15 = sadd.s32 4294967294, %s444_s14   ;;  %s444_s14 = sphi %s476_s14, %s647_s14   ;;  %s440_s13 = sphi %s474_s13, %s646_s13   ;;  %s436_s12 = sphi %s472_s12, %s645_s12   ;;  %s432_s11 = sphi %s470_s11, %s644_s11  }
   0x8   : > { %s495_s16 = sadd.s32 1, %s444_s14   ;;  %s47_s17 = sadd.s32 1, %s440_s13 }
   0x9   : > { %s44_s18 = ssub.s32 %s444_s14, %s495_s16  ;;  %p54_p0 = scmp.ne.s32.totalorder %s440_s13, %s436_s12 }
   0xa   : > { %p45_p1 = scmp.eq.s32.totalorder %s44_s18, 0  ;;  %p55_p2 = scmp.eq.s32.totalorder %s444_s14, 0 }
   0xb   : > { %p60_p3 = scmp.ne.s32.totalorder %s436_s12, %s432_s11  ;;  %p61_p4 = scmp.eq.s32.totalorder %s491_s0, 0 }
   0xc   : > { %s507_s19 = scalar_select %p45_p1, %s440_s13, %s47_s17  }
   0xd   : > { %p509_p5 = por %p55_p2, %p54_p0  ;;  %p513_p6 = por %p61_p4, %p60_p3 }
   0xe   : > { %p84_p7 = scmp.eq.s32.totalorder %s491_s0, 1  ;;  %p90_p8 = scmp.eq.s32.totalorder %s272_s15, 1 }
   0xf   : > { %p302_p10 = scmp.lt.s32.totalorder %s444_s14, 2  ;;  %s113_s24 = sand.u32 1, %s440_s13  }
  0x10   : > { %p520_p11 = por %p84_p7, %p54_p0  ;;  %p524_p12 = por %p90_p8, %p60_p3 }
  0x11   : > { %s288_s25 = sshll.u32 %s444_s14, 8  ;;  %s275_s26 = sshll.u32 %s113_s24, 4 }
  0x12   : > { %s638_s22 = scalar_select %p520_p11, 1, 0 }
  0x13   : > { %s639_s23 = scalar_select %p524_p12, 1, 0 }
  0x14   : > { %s533_s29 = scalar_lea.hbm %s633_s1, %s288_s25  ;;  %s117_s30 = scalar_lea.vmem [#allocation3], %s275_s26 }
  0x15   : > { %s124_s3 = sshll.u32 %s117_s30, 4  ;;  %p537_p13 = pnand %p302_p10, %p509_p5  ;;  %s541_s3 = int_to_ptr.vmem [resolvable:$true] %s124_s3 }
  0x16   : > { %s543_s5 = scalar_lea.sflag [#allocation4], %s113_s24  ;;  %s348_s6 = scalar_lea.hbm %s533_s29, 256 }
  0x17   : > { %p349_p0 = scmp.ne.s32.totalorder %s533_s29, %s348_s6  ;;  %p350_p1 = pneg %p537_p13 }
  0x18   : > { %s353_s9 = scalar_lea.hbm %s633_s1, 512  ;;  %p354_p4 = scmp.lt.u32.totalorder %s533_s29, %s633_s1 }
  0x19   : > { %p351_p2 = pnand %p350_p1, %p349_p0  ;;  %p355_p5 = scmp.lt.u32.totalorder %s353_s9, %s348_s6 }
  0x1a   : > { %p357_p8 = scmp.lt.u32.totalorder %s348_s6, %s533_s29 }
  0x1b   : > { %p352_p3 = pneg %p351_p2  ;;  %p356_p7 = por %p355_p5, %p354_p4 }
  0x1d   : > { %p358_p10 = por %p357_p8, %p356_p7 }
  0x1f   : > { %p359_p9 = pnand %p358_p10, %p352_p3 }
  0x21   : > { %362 = shalt.err (!%p359_p9)
}
  0x22   : > { %s363_s17 = scalar_lea.vmem %s541_s3, 256  ;;  %s446_s18 = smov [#allocation3]  }
  0x23   : > { %p364_p0 = scmp.ne.s32.totalorder %s541_s3, %s363_s17  ;;  %s368_s20 = sshll.u32 %s446_s18, 4  ;;  %s369_s20 = int_to_ptr.vmem [resolvable:$false] %s368_s20 }
  0x24   : > { %s370_s24 = scalar_lea.vmem %s369_s20, 512  ;;  %p371_p11 = scmp.lt.s32.totalorder %s541_s3, %s369_s20 }
  0x25   : > { %p366_p2 = pnand %p364_p0, %p350_p1  ;;  %p372_p4 = scmp.lt.s32.totalorder %s370_s24, %s363_s17 }
  0x27   : > { %p367_p12 = pneg %p366_p2  ;;  %p373_p5 = por %p372_p4, %p371_p11 }
  0x29   : > { %p374_p7 = pnand %p373_p5, %p367_p12 }
  0x2b   : > { %377 = shalt.err (!%p374_p7)
}
  0x2c   : > { %s447_s25 = smov 128   ;;  %s448_s26 = smov 8  }
  0x2d   : > { %297 = dma.hbm_to_vmem [thread:$0]  (!%p537_p13), %s533_s29, 256, %s541_s3, %s543_s5, %s447_s25, %s447_s25, %s448_s26  }
  0x2e   : > { %p278_p9 = scmp.ge.s32.totalorder %s444_s14, 1  ;;  %p132_p1 = scmp.lt.s32.totalorder %s444_s14, 3 }
  0x30   : > { %p133_p3 = pnand %p278_p9, %p132_p1 }
  0x31   : > { %s574_s27 = sand.u32 (!%p133_p3), 1, %s436_s12  }
  0x32   : > { %136 = sbr.rel (%p133_p3) target bundleno = 109 (0x6d), region = 28  ;;  %s279_s28 = sshll.u32 (!%p133_p3), %s574_s27, 4 }
  0x33   : > { %s139_s30 = scalar_lea.sflag (!%p133_p3), [#allocation4], %s574_s27  ;;  %s142_s6 = scalar_lea.vmem (!%p133_p3), [#allocation3], %s279_s28 }
  0x39   : > { %423 = dma.done.wait (%p513_p6), %s139_s30, 256  }
  0x3a   : > { %425 = vsyncadd (%p513_p6), %s139_s30, 4294967040  ;;  %s167_s4 = sld [smem:[#allocation2]]  ;;  %v165_v0 = vld [vmem:[%s142_s6] sm:$0xff]  ;;  %v166_v1 = vld [vmem:[%s142_s6 + $0x8] sm:$0xff]  ;;  %s162_s21 = scalar_lea.vmem [#allocation6], %s279_s28 }
  0x3b   : > { %s199_s29 = sshll.u32 %s162_s21, 4  ;;  %s289_s3 = sshll.u32 %s491_s0, 8  ;;  %s583_s29 = int_to_ptr.vmem [resolvable:$true] %s199_s29 }
  0x3c   : > { %s588_s8 = scalar_lea.hbm %s634_s2, %s289_s3  ;;  %s186_s9 = scalar_lea.sflag [#allocation5], %s574_s27 }
  0x3d   : > { %s378_s10 = scalar_lea.vmem %s583_s29, 256  ;;  %p641_p11 = scmp.ne.s32.totalorder %s638_s22, 0 }
  0x3e   : > { %p379_p6 = scmp.ne.s32.totalorder %s583_s29, %s378_s10  ;;  %s449_s0 = smov [#allocation6]  }
  0x3f   : > { %s382_s15 = sshll.u32 %s449_s0, 4  ;;  %s383_s15 = int_to_ptr.vmem [resolvable:$false] %s382_s15 }
  0x40   : > { %v168_v2 = vstv %s167_s4  ;;  %p380_p12 = pnand %p379_p6, %p641_p11  ;;  %s384_s17 = scalar_lea.vmem %s383_s15, 512 }
  0x41   : > { %v169_v3 = vadd.f32 %v168_v2, %v165_v0  ;;  %v170_v4 = vadd.f32 %v168_v2, %v166_v1  ;;  %p385_p8 = scmp.lt.s32.totalorder %s583_s29, %s383_s15  ;;  %p386_p10 = scmp.lt.s32.totalorder %s384_s17, %s378_s10 }
  0x42   : > { %p381_p13 = pneg %p380_p12 }
  0x43   : > { %v281_v5 = vmul.f32 -1.442695, %v169_v3  ;;  %v282_v6 = vmul.f32 -1.442695, %v170_v4  ;;  %p387_p0 = por %p386_p10, %p385_p8 }
  0x45   : > { %340 = vpow2.f32 %v281_v5  ;;  %p388_p2 = pnand %p387_p0, %p381_p13 }
  0x46   : > { %342 = vpow2.f32 %v282_v6 }
  0x4f   : > { %v341_v7 = vpop.eup %340 }
  0x50   : > { %v343_v8 = vpop.eup %342  ;;  %v177_v9 = vadd.f32 1.0, %v341_v7 }
  0x51   : > { %v178_v10 = vadd.f32 1.0, %v343_v8 }
  0x52   : > { %344 = vrcp.f32 %v177_v9 }
  0x53   : > { %346 = vrcp.f32 %v178_v10 }
  0x5c   : > { %v345_v11 = vpop.eup %344 }
  0x5d   : > { %v347_v12 = vpop.eup %346  ;;  %183 = vst [vmem:[%s162_s21] sm:$0xff] %v345_v11 }
  0x5e   : > { %184 = vst [vmem:[%s162_s21 + $0x8] sm:$0xff] %v347_v12 }
  0x5f   : > { %391 = shalt.err (!%p388_p2)
}
  0x60   : > { %s392_s18 = scalar_lea.hbm %s588_s8, 256  ;;  %s396_s25 = scalar_lea.hbm %s634_s2, 512 }
  0x61   : > { %p393_p4 = scmp.ne.s32.totalorder %s588_s8, %s392_s18  ;;  %p397_p9 = scmp.lt.u32.totalorder %s588_s8, %s634_s2 }
  0x62   : > { %p398_p1 = scmp.lt.u32.totalorder %s396_s25, %s392_s18  ;;  %p400_p6 = scmp.lt.u32.totalorder %s392_s18, %s588_s8 }
  0x63   : > { %p394_p5 = pnand %p393_p4, %p641_p11 }
  0x64   : > { %p399_p3 = por %p398_p1, %p397_p9 }
  0x65   : > { %p395_p7 = pneg %p394_p5 }
  0x66   : > { %p401_p12 = por %p400_p6, %p399_p3 }
  0x68   : > { %p402_p13 = pnand %p401_p12, %p395_p7 }
  0x6a   : > { %405 = shalt.err (!%p402_p13)
}
  0x6b   : > { %s450_s30 = smov 128   ;;  %s451_s6 = smov 8  }
  0x6c   : > { %292 = dma.vmem_to_hbm [thread:$0]  (%p641_p11), %s583_s29, 256, %s588_s8, %s186_s9, %s450_s30, %s450_s30, %s451_s6  }
  0x6d PF: > { %s214_s4 = sand.u32 1, %s432_s11   ;;  %p642_p8 = scmp.ne.s32.totalorder %s639_s23, 0 }
  0x6e   : > { %p643_p10 = scmp.ge.s32.totalorder %s444_s14, 2  ;;  %s215_s21 = scalar_lea.sflag [#allocation5], %s214_s4 }
  0x70   : > { %p299_p0 = pnand %p643_p10, %p642_p8 }
  0x72   : > { %427 = dma.done.wait (!%p299_p0), %s215_s21, 256  }
  0x73   : > { %429 = vsyncadd (!%p299_p0), %s215_s21, 4294967040  ;;  %p16_p2 = scmp.ge.s32.totalorder %s495_s16, 4   ;;  %s644_s11 = smov %s436_s12 }
  0x74   : > { %s645_s12 = smov %s440_s13  ;;  %s646_s13 = smov %s507_s19 }
  0x75   : > { %s647_s14 = smov %s495_s16  ;;  %18 = sbr.rel (!%p16_p2) target bundleno = 7 (0x7), region = 73 }
  0x7c   :  { %220 = vsyncpa [#allocation4], 1 }
  0x7d   :  { %222 = vsyncpa [#allocation4 + $0x1], 1 }
  0x7e   :  { %223 = vsyncpa [#allocation5], 1 }
  0x7f   :  { %225 = vsyncpa [#allocation5 + $0x1], 1 }

</bundles_post_ra>
